<compile_context>
chip_gen: v5e
topology: v5e:2x2
jax: 0.10.0
libtpu: 0.0.40
codegen_flags: <defaults>
</compile_context>

<pallas_src>
import jax
import jax.numpy as jnp
from jax.experimental import pallas as pl
from jax.experimental.pallas import tpu as pltpu

_MiB = 1024 * 1024


# ----------------------------------------------------------------------------
# Hardware / tiling helpers (host-side, trace-time only)
# ----------------------------------------------------------------------------
def _vmem_capacity_bytes():
    """Per-TensorCore VMEM capacity; conservative fallback (v7x) if unknown."""
    try:
        info = pltpu.get_tpu_info()
        cap = getattr(info, "vmem_capacity_bytes", None)
        if cap:
            return int(cap)
    except Exception:
        pass
    return 64 * _MiB  # v7x per-TC VMEM; safe lower bound for v5e/v6e too


def _largest_divisor_leq(n, k):
    k = max(1, min(n, int(k)))
    for d in range(k, 0, -1):
        if n % d == 0:
            return d
    return 1


def _choose_tiling(n, ci, co, hw, in_item, out_item, budget_bytes):
    """Pick (images-per-step nb, pixels-per-step tp) from a VMEM budget."""
    # Conservative VMEM bytes per pixel per grid step:
    #   double-buffered input + output blocks, plus in-kernel f32 temporaries
    #   (x cast, pregate, gate, product).
    per_px = 2 * (ci * in_item + co * out_item) + 4 * (ci + 3 * co)
    px_target = max(128, (budget_bytes // per_px) // 128 * 128)

    if hw > px_target:
        # Large image: lane-aligned pixel tiles, one image per step.
        nb, tp = 1, px_target
    else:
        # Whole image fits: fold several images per step (nb divides n, so no
        # partial batch blocks).  tp = full spatial extent -> no 128 constraint.
        nb = _largest_divisor_leq(n, px_target // hw)
        tp = hw

    # v7x has 2 TensorCores sharded over "parallel" grid axes: guarantee >= 2
    # grid steps whenever we can do so lane-densely.
    total_steps = -(-n // nb) * -(-hw // tp)
    if total_steps < 2:
        if n >= 2:
            nb = _largest_divisor_leq(n, -(-n // 2))      # >= 2 batch steps
        elif hw >= 256:
            tp = 128 * (-(-hw // 256))                    # 2 lane-aligned pixel tiles
    return nb, tp


# ----------------------------------------------------------------------------
# Pallas kernel: fused GatedConv2d (1x1 conv variant), pixels on the lane axis
# ----------------------------------------------------------------------------
def _make_gated_conv1x1_kernel(nb):
    """Kernel over a block of nb images: x (nb, Ci, TP) -> out (nb, Co, TP)."""

    def kernel(x_ref, w1_ref, b1_ref, w2_ref, b2_ref, o_ref):
        # Weights/biases are tiny and resident in VMEM; load once per step.
        w1 = w1_ref[...]
        b1 = b1_ref[...]
        w2 = w2_ref[...]
        b2 = b2_ref[...]

        def per_image(b):
            # (Ci, TP) pixel slab — channels on sublanes, pixels on lanes.
            # Compute in f32 regardless of I/O dtype (v5e has no bf16 VPU/EUP).
            x = x_ref[b].astype(jnp.float32)
            # pregate: 1x1 conv + Tanh (tiny MXU matmul; kernel is HBM-bound).
            x1 = jnp.tanh(
                jnp.dot(w1, x, preferred_element_type=jnp.float32) + b1
            )
            # gate: 1x1 conv + Sigmoid.  sigmoid(z) == 0.5*(1 + tanh(0.5*z)):
            # one EUP transcendental instead of exp + reciprocal.
            z = jnp.dot(w2, x1, preferred_element_type=jnp.float32) + b2
            g = 0.5 * (1.0 + jnp.tanh(0.5 * z))
            o_ref[b] = (x1 * g).astype(o_ref.dtype)

        if nb <= 8:
            for b in range(nb):          # static unroll for small image counts
                per_image(b)
        else:
            pl.loop(0, nb)(per_image)    # dynamic loop for large batch blocks

    return kernel


def gated_conv2d_1x1(x_nchw, w1, b1, w2, b2):
    """Fused GatedConv2d (kernel_size=1, stride=1, padding=0) forward.

    x_nchw: (N, Ci, H, W) float32 or bfloat16
    w1: (Co, Ci), b1: (Co, 1), w2: (Co, Co), b2: (Co, 1)  (PyTorch conv weights
        of shape (Co, Ci, 1, 1) squeezed to (Co, Ci) — no transpose needed).
    returns (N, Co, H, W) in x's dtype (accumulation is f32 inside the kernel).
    """
    n, ci, h, w = x_nchw.shape
    co = w1.shape[0]
    hw = h * w
    x = x_nchw.reshape(n, ci, hw)        # free reshape, NCHW order preserved

    out_dtype = x.dtype
    in_item = x.dtype.itemsize
    out_item = jnp.dtype(out_dtype).itemsize

    # VMEM-budget-derived tiling (re-derived per chip generation).
    cap = _vmem_capacity_bytes()
    budget = min(cap // 3, 40 * _MiB)
    nb, tp = _choose_tiling(n, ci, co, hw, in_item, out_item, budget)

    block_bytes = (2 * (ci * in_item + co * out_item) + 4 * (ci + 3 * co)) * nb * tp
    w_bytes = 4 * (co * ci + co * co + 2 * co)
    vmem_limit = int(
        max(32 * _MiB, min(cap - 16 * _MiB, block_bytes + w_bytes + 24 * _MiB))
    )

    grid = (pl.cdiv(n, nb), pl.cdiv(hw, tp))

    # NOTE: jnp.dot f32 default precision may be multi-pass bf16 on the MXU; at
    # CRNN channel widths the error is negligible, so we keep the default.
    out = pl.pallas_call(
        _make_gated_conv1x1_kernel(nb),
        out_shape=jax.ShapeDtypeStruct((n, co, hw), out_dtype),
        grid=grid,
        in_specs=[
            pl.BlockSpec((nb, ci, tp), lambda bi, pi: (bi, 0, pi)),  # pixel slab
            pl.BlockSpec((co, ci), lambda bi, pi: (0, 0)),           # W1 (resident)
            pl.BlockSpec((co, 1), lambda bi, pi: (0, 0)),            # b1
            pl.BlockSpec((co, co), lambda bi, pi: (0, 0)),           # W2 (resident)
            pl.BlockSpec((co, 1), lambda bi, pi: (0, 0)),            # b2
        ],
        out_specs=pl.BlockSpec((nb, co, tp), lambda bi, pi: (bi, 0, pi)),
        compiler_params=pltpu.CompilerParams(
            dimension_semantics=("parallel", "parallel"),
            vmem_limit_bytes=vmem_limit,
        ),
    )(x, w1, b1, w2, b2)

    return out.reshape(n, co, h, w)


# ----------------------------------------------------------------------------
# Module wrapper (parameter setup in plain JAX)
# ----------------------------------------------------------------------------
class GatedConv2dPallas:
    """Mirrors GatedConv2d(in_channels, out_channels, kernel_size=1,
    activation=torch.nn.Tanh(), stride=1, padding=0)."""

    def __init__(self, in_channels, out_channels, key):
        # TODO(synk): kernel_size > 1 with default padding=0 makes the original
        # PyTorch forward fail its own shape check at `x * y`; only the runnable
        # kernel_size=1 configuration is implemented here.
        k1, k2, k3, k4 = jax.random.split(key, 4)
        # PyTorch Conv2d default init: U(-1/sqrt(fan_in), 1/sqrt(fan_in)),
        # fan_in = in_channels * kh * kw (kh = kw = 1 here).
        bnd1 = 1.0 / jnp.sqrt(float(in_channels))
        bnd2 = 1.0 / jnp.sqrt(float(out_channels))
        self.w1 = jax.random.uniform(
            k1, (out_channels, in_channels), jnp.float32, -bnd1, bnd1)
        self.b1 = jax.random.uniform(
            k2, (out_channels, 1), jnp.float32, -bnd1, bnd1)
        self.w2 = jax.random.uniform(
            k3, (out_channels, out_channels), jnp.float32, -bnd2, bnd2)
        self.b2 = jax.random.uniform(
            k4, (out_channels, 1), jnp.float32, -bnd2, bnd2)

    def __call__(self, x_nchw):
        return gated_conv2d_1x1(x_nchw, self.w1, self.b1, self.w2, self.b2)


# Pure-JAX reference (same math) for a correctness check.
def _reference(x_nchw, w1, b1, w2, b2):
    n, c, h, w = x_nchw.shape
    x = x_nchw.astype(jnp.float32).reshape(n, c, h * w)
    x1 = jnp.tanh(jnp.einsum("oc,ncp->nop", w1, x) + b1[None])
    g = jax.nn.sigmoid(jnp.einsum("oc,ncp->nop", w2, x1) + b2[None])
    return (x1 * g).reshape(n, w1.shape[0], h, w)


if __name__ == "__main__":
    key = jax.random.PRNGKey(0)
    xkey, pkey = jax.random.split(key)

    in_channels, out_channels = 4, 16
    x = jax.random.normal(xkey, (2, in_channels, 16, 16), jnp.float32)  # NCHW

    mod = GatedConv2dPallas(in_channels, out_channels, pkey)
    fwd = jax.jit(mod.__call__)

    # f32 path
    out = jax.block_until_ready(fwd(x))
    ref = _reference(x, mod.w1, mod.b1, mod.w2, mod.b2)
    assert out.shape == (2, out_channels, 16, 16), out.shape
    assert jnp.allclose(out, ref, atol=1e-5, rtol=1e-5), float(
        jnp.max(jnp.abs(out - ref))
    )

    # bf16 I/O smoke test (compute stays f32 inside the kernel)
    out_bf16 = jax.block_until_ready(fwd(x.astype(jnp.bfloat16)))
    assert out_bf16.dtype == jnp.bfloat16
    assert jnp.allclose(out_bf16.astype(jnp.float32), ref, atol=3e-2), float(
        jnp.max(jnp.abs(out_bf16.astype(jnp.float32) - ref))
    )

    print("KERNEL_OK")
</pallas_src>

<mosaic_0001>
module attributes {stable_mosaic.version = 11 : i64} {
  func.func @kernel(%arg0: i32, %arg1: i32, %arg2: memref<1x4x256xf32, #tpu.memory_space<vmem>>, %arg3: memref<16x4xf32, #tpu.memory_space<vmem>>, %arg4: memref<16x1xf32, #tpu.memory_space<vmem>>, %arg5: memref<16x16xf32, #tpu.memory_space<vmem>>, %arg6: memref<16x1xf32, #tpu.memory_space<vmem>>, %arg7: memref<1x16x256xf32, #tpu.memory_space<vmem>>) attributes {dimension_semantics = [#tpu.dimension_semantics<parallel>, #tpu.dimension_semantics<parallel>], iteration_bounds = array<i64: 2, 1>, scalar_prefetch = 0 : i64, scratch_operands = 0 : i64, tpu.core_type = #tpu.core_type<tc>, window_params = [{transform_indices = @transform_0, window_bounds = array<i64: 1, 4, 256>}, {pipeline_mode = #tpu.pipeline_mode<synchronous>, transform_indices = @transform_1, window_bounds = array<i64: 16, 4>}, {pipeline_mode = #tpu.pipeline_mode<synchronous>, transform_indices = @transform_2, window_bounds = array<i64: 16, 1>}, {pipeline_mode = #tpu.pipeline_mode<synchronous>, transform_indices = @transform_3, window_bounds = array<i64: 16, 16>}, {pipeline_mode = #tpu.pipeline_mode<synchronous>, transform_indices = @transform_4, window_bounds = array<i64: 16, 1>}, {transform_indices = @transform_5, window_bounds = array<i64: 1, 16, 256>}]} {
    %c0 = arith.constant 0 : index
    %c0_0 = arith.constant 0 : index
    %0 = vector.load %arg3[%c0, %c0_0] : memref<16x4xf32, #tpu.memory_space<vmem>>, vector<16x4xf32>
    %c0_1 = arith.constant 0 : index
    %c0_2 = arith.constant 0 : index
    %1 = vector.load %arg4[%c0_1, %c0_2] : memref<16x1xf32, #tpu.memory_space<vmem>>, vector<16x1xf32>
    %c0_3 = arith.constant 0 : index
    %c0_4 = arith.constant 0 : index
    %2 = vector.load %arg5[%c0_3, %c0_4] : memref<16x16xf32, #tpu.memory_space<vmem>>, vector<16x16xf32>
    %c0_5 = arith.constant 0 : index
    %c0_6 = arith.constant 0 : index
    %3 = vector.load %arg6[%c0_5, %c0_6] : memref<16x1xf32, #tpu.memory_space<vmem>>, vector<16x1xf32>
    %c0_7 = arith.constant 0 : index
    %c0_8 = arith.constant 0 : index
    %c0_9 = arith.constant 0 : index
    %4 = vector.load %arg2[%c0_7, %c0_8, %c0_9] : memref<1x4x256xf32, #tpu.memory_space<vmem>>, vector<1x4x256xf32>
    %5 = vector.shape_cast %4 : vector<1x4x256xf32> to vector<4x256xf32>
    %cst = arith.constant dense<0.000000e+00> : vector<16x256xf32>
    %6 = tpu.matmul %0, %5, %cst {dimension_numbers = #tpu.dot_dimension_numbers<[1], [0], [0], [1], [0, 0, 1, 1], [], []>} : vector<16x4xf32>, vector<4x256xf32>, vector<16x256xf32> -> vector<16x256xf32>
    %7 = vector.broadcast %1 : vector<16x1xf32> to vector<16x256xf32>
    %8 = arith.addf %6, %7 : vector<16x256xf32>
    %9 = math.tanh %8 : vector<16x256xf32>
    %cst_10 = arith.constant dense<0.000000e+00> : vector<16x256xf32>
    %10 = tpu.matmul %2, %9, %cst_10 {dimension_numbers = #tpu.dot_dimension_numbers<[1], [0], [0], [1], [0, 0, 1, 1], [], []>} : vector<16x16xf32>, vector<16x256xf32>, vector<16x256xf32> -> vector<16x256xf32>
    %11 = vector.broadcast %3 : vector<16x1xf32> to vector<16x256xf32>
    %12 = arith.addf %10, %11 : vector<16x256xf32>
    %cst_11 = arith.constant 5.000000e-01 : f32
    %13 = vector.broadcast %cst_11 : f32 to vector<16x256xf32>
    %14 = arith.mulf %13, %12 : vector<16x256xf32>
    %15 = math.tanh %14 : vector<16x256xf32>
    %cst_12 = arith.constant 1.000000e+00 : f32
    %16 = vector.broadcast %cst_12 : f32 to vector<16x256xf32>
    %17 = arith.addf %16, %15 : vector<16x256xf32>
    %cst_13 = arith.constant 5.000000e-01 : f32
    %18 = vector.broadcast %cst_13 : f32 to vector<16x256xf32>
    %19 = arith.mulf %18, %17 : vector<16x256xf32>
    %20 = arith.mulf %9, %19 : vector<16x256xf32>
    %c0_14 = arith.constant 0 : index
    %c0_15 = arith.constant 0 : index
    %c0_16 = arith.constant 0 : index
    %21 = vector.load %arg7[%c0_14, %c0_15, %c0_16] : memref<1x16x256xf32, #tpu.memory_space<vmem>>, vector<1x16x256xf32>
    %22 = vector.shape_cast %21 : vector<1x16x256xf32> to vector<16x256xf32>
    %23 = vector.shape_cast %20 : vector<16x256xf32> to vector<1x16x256xf32>
    tpu.vector_store %arg7[%c0_14, %c0_15, %c0_16], %23 {strides = array<i32>} : memref<1x16x256xf32, #tpu.memory_space<vmem>>, vector<1x16x256xf32>,
    return
  }
  func.func @transform_0(%arg0: i32, %arg1: i32) -> (i32, i32, i32) {
    %c0_i32 = arith.constant 0 : i32
    %c0_i32_0 = arith.constant 0 : i32
    return %arg0, %c0_i32, %arg1 : i32, i32, i32
  }
  func.func @transform_1(%arg0: i32, %arg1: i32) -> (i32, i32) {
    %c0_i32 = arith.constant 0 : i32
    %c0_i32_0 = arith.constant 0 : i32
    %c0_i32_1 = arith.constant 0 : i32
    return %c0_i32, %c0_i32_0 : i32, i32
  }
  func.func @transform_2(%arg0: i32, %arg1: i32) -> (i32, i32) {
    %c0_i32 = arith.constant 0 : i32
    %c0_i32_0 = arith.constant 0 : i32
    %c0_i32_1 = arith.constant 0 : i32
    return %c0_i32, %c0_i32_0 : i32, i32
  }
  func.func @transform_3(%arg0: i32, %arg1: i32) -> (i32, i32) {
    %c0_i32 = arith.constant 0 : i32
    %c0_i32_0 = arith.constant 0 : i32
    %c0_i32_1 = arith.constant 0 : i32
    return %c0_i32, %c0_i32_0 : i32, i32
  }
  func.func @transform_4(%arg0: i32, %arg1: i32) -> (i32, i32) {
    %c0_i32 = arith.constant 0 : i32
    %c0_i32_0 = arith.constant 0 : i32
    %c0_i32_1 = arith.constant 0 : i32
    return %c0_i32, %c0_i32_0 : i32, i32
  }
  func.func @transform_5(%arg0: i32, %arg1: i32) -> (i32, i32, i32) {
    %c0_i32 = arith.constant 0 : i32
    %c0_i32_0 = arith.constant 0 : i32
    return %arg0, %c0_i32, %arg1 : i32, i32, i32
  }
}

</mosaic_0001>

<bundles_post_ra>
// kernel: a_call__.1
= control target key start
LH: loop header
LB: loop body
LE: loop exit
PB: predicated region body
PF: predicated region fallthrough
CT: control target
= control target key end

     0   :  { %s644_s18 = smov 0   ;;  %s646_s19 = smov 0   ;;  %s705_s0 = inlined_call_operand.vmem [shape: f32[2,4,256], index: 0, kind: input, shape index: {}]   ;;  %s706_s1 = inlined_call_operand.vmem [shape: f32[16,4], index: 1, kind: input, shape index: {}]   ;;  %s707_s2 = inlined_call_operand.vmem [shape: f32[16,1], index: 2, kind: input, shape index: {}]   ;;  %s708_s3 = inlined_call_operand.vmem [shape: f32[16,16], index: 3, kind: input, shape index: {}]   ;;  %s709_s4 = inlined_call_operand.vmem [shape: f32[16,1], index: 4, kind: input, shape index: {}]   ;;  %s710_s5 = inlined_call_operand.vmem [shape: f32[2,16,256], index: 5, kind: output, shape index: {}]  }
   0x1   :  { %s648_s20 = smov 0  }
   0x2 LB: > { %s27_s21 = sadd.s32 1, %s607_s19  ;;  %p527_p0 = scmp.ge.s32.totalorder %s611_s20, 1  ;;  %s611_s20 = sphi %s648_s20, %s15_s20   ;;  %s607_s19 = sphi %s646_s19, %s712_s19   ;;  %s603_s18 = sphi %s644_s18, %s711_s18  }
   0x3   : > { %p29_p1 = scmp.ge.s32.totalorder %s27_s21, 2  ;;  %p208_p2 = scmp.lt.s32.totalorder %s611_s20, 3 }
   0x5   : > { %s714_s21 = smov (%p29_p1, %s27_s21), 0  ;;  %p209_p3 = pnand %p527_p0, %p208_p2 }
   0x6   : > { %p245_p4 = scmp.lt.s32.totalorder (!%p209_p3), %s603_s18, 1 }
   0x7   : > { %212 = sbr.rel (%p209_p3) target bundleno = 330 (0x14a), region = 40 }
   0xc   : > { %v267_v0 = vld [vmem:[%s707_s2 + $0x8] sm:$0xff]  ;;  %v613_v1 = vmov 0   ;;  %s716_s18 = smov (!%p245_p4, %s603_s18), 1  ;;  %v266_v3 = vld [vmem:[%s707_s2] sm:$0xff]  ;;  %vm294_vm0 = vcmask 1043456   ;;  %vm287_vm1 = vcmask 31744  }
   0xd   : > { %571 = vset.pattern.permute.xlu0 %v613_v1  ;;  %572 = vset.pattern.permute.xlu1 %v613_v1  ;;  %s544_s24 = sshll.u32 %s716_s18, 3  ;;  %v264_v4 = vld [vmem:[%s706_s1] sm:$0xff]  ;;  %v265_v7 = vld [vmem:[%s706_s1 + $0x8] sm:$0xff]  ;;  %vm359_vm2 = vcmask 130048   ;;  %s545_s17 = sshll.u32 %s716_s18, 5 }
   0xe   : > { %280 = vperm.xlu0 %571, %v267_v0   ;;  %s252_s27 = scalar_lea.vmem %s705_s0, %s544_s24  ;;  %v270_v9 = vld [vmem:[%s709_s4] sm:$0xff]  ;;  %v271_v12 = vld [vmem:[%s709_s4 + $0x8] sm:$0xff]  ;;  %s262_s24 = scalar_lea.vmem %s710_s5, %s545_s17 }
   0xf   : > { %v272_v2 = vld [vmem:[%s252_s27] sm:$0xff]  ;;  %351 = vperm.xlu1 %572, %v270_v9   ;;  %v269_v25 = vld [vmem:[%s708_s3 + $0x8] sm:$0xff] }
  0x10   : > { %284 = vst [vmem:[#allocation1] ss:$2 sm:$0xff] %v272_v2  ;;  %v268_v22 = vld [vmem:[%s708_s3] sm:$0xff] }
  0x16   : > { %275 = vperm.xlu0 %571, %v266_v3  }
  0x17   : > { %v285_v5 = vld.sshfl [vmem:[#allocation1] sm:$0xff pattern:$0x75316420]  ;;  %v286_v6 = vld.sshfl [vmem:[#allocation1 + $0x8] sm:$0xff pattern:$0x75316420]  ;;  %356 = vperm.xlu1 %572, %v271_v12  }
  0x18   : > { %532 = vmatpush.msk.msra.mxu0 %vm294_vm0, %v285_v5  ;;  %535 = vmatpush.msk.msra.mxu1 %vm294_vm0, %v286_v6 }
  0x19   : > { %533 = vmatmul.msk.f32.vlgmr.msra.gmra.mxu0 %vm287_vm1, %v264_v4  ;;  %536 = vmatmul.msk.f32.vlgmr.msra.gmra.mxu1 %vm287_vm1, %v264_v4 }
  0x21   : > { %534 = vmatmul.msk.f32.gmra.mxu0 %vm287_vm1, %v265_v7  ;;  %537 = vmatmul.msk.f32.gmra.mxu1 %vm287_vm1, %v265_v7 }
  0x80   : > { %v281_v8 = vpop.permute.xlu0 %280 }
  0x81   : > { %v352_v26 = vpop.permute.xlu1 %351 }
  0x88   : > { %v276_v13 = vpop.permute.xlu0 %275 }
  0x89   : > { %v357_v33 = vpop.permute.xlu1 %356 }
  0x96   : > { %v316_v10 = vpop.f32.mrf.mxu0  ;;  %v339_v11 = vpop.f32.mrf.mxu1 }
  0x97   : > { %v317_v16 = vadd.f32 %v316_v10, %v276_v13  ;;  %v340_v19 = vadd.f32 %v339_v11, %v276_v13 }
  0x9e   : > { %v319_v14 = vpop.f32.mrf.mxu0  ;;  %v342_v15 = vpop.f32.mrf.mxu1 }
  0x9f   : > { %v320_v17 = vadd.f32 %v319_v14, %v281_v8  ;;  %v343_v18 = vadd.f32 %v342_v15, %v281_v8 }
  0xa1   : > { %573 = vtanh.f32 %v320_v17 }
  0xa2   : > { %575 = vtanh.f32 %v343_v18 }
  0xa3   : > { %577 = vtanh.f32 %v317_v16 }
  0xa4   : > { %579 = vtanh.f32 %v340_v19 }
  0xa7   : > { %v574_v20 = vpop.eup %573 }
  0xa8   : > { %v576_v21 = vpop.eup %575  ;;  %380 = vmatpush.msra.mxu2 %v574_v20 }
  0xa9   : > { %v578_v23 = vpop.eup %577  ;;  %403 = vmatpush.msra.mxu3 %v576_v21 }
  0xaa   : > { %v580_v24 = vpop.eup %579  ;;  %381 = vmatpush.msra.mxu2 %v578_v23 }
  0xab   : > { %404 = vmatpush.msra.mxu3 %v580_v24  ;;  %538 = vmatmul.msk.f32.vlgmr.msra.gmra.mxu2 %vm359_vm2, %v268_v22 }
  0xac   : > { %540 = vmatmul.msk.f32.vlgmr.msra.gmra.mxu3 %vm359_vm2, %v268_v22 }
  0xb3   : > { %539 = vmatmul.msk.f32.gmra.mxu2 %vm359_vm2, %v269_v25 }
  0xb4   : > { %541 = vmatmul.msk.f32.gmra.mxu3 %vm359_vm2, %v269_v25 }
 0x12e   : > { %v383_v27 = vpop.f32.mrf.mxu2 }
 0x12f   : > { %v384_v28 = vadd.f32 %v383_v27, %v352_v26  ;;  %v406_v29 = vpop.f32.mrf.mxu3 }
 0x130   : > { %v407_v30 = vadd.f32 %v406_v29, %v352_v26 }
 0x131   : > { %v412_v31 = vmul.f32 0.5, %v384_v28 }
 0x132   : > { %v413_v32 = vmul.f32 0.5, %v407_v30 }
 0x133   : > { %581 = vtanh.f32 %v412_v31 }
 0x134   : > { %583 = vtanh.f32 %v413_v32 }
 0x136   : > { %v386_v34 = vpop.f32.mrf.mxu2 }
 0x137   : > { %v387_v35 = vadd.f32 %v386_v34, %v357_v33  ;;  %v409_v36 = vpop.f32.mrf.mxu3 }
 0x138   : > { %v410_v37 = vadd.f32 %v409_v36, %v357_v33 }
 0x139   : > { %v582_v38 = vpop.eup %581  ;;  %v414_v39 = vmul.f32 0.5, %v387_v35 }
 0x13a   : > { %v584_v40 = vpop.eup %583  ;;  %v420_v41 = vadd.f32 1.0, %v582_v38  ;;  %v415_v42 = vmul.f32 0.5, %v410_v37 }
 0x13b   : > { %v421_v43 = vadd.f32 1.0, %v584_v40  ;;  %585 = vtanh.f32 %v414_v39 }
 0x13c   : > { %v424_v44 = vmul.f32 0.5, %v420_v41  ;;  %587 = vtanh.f32 %v415_v42 }
 0x13d   : > { %v425_v45 = vmul.f32 0.5, %v421_v43 }
 0x13e   : > { %v428_v46 = vmul.f32 %v578_v23, %v424_v44 }
 0x13f   : > { %v429_v47 = vmul.f32 %v580_v24, %v425_v45 }
 0x140   : > { %432 = vst [vmem:[%s262_s24] sm:$0xff] %v428_v46 }
 0x141   : > { %v586_v48 = vpop.eup %585  ;;  %433 = vst [vmem:[%s262_s24 + $0x8] sm:$0xff] %v429_v47 }
 0x142   : > { %v588_v49 = vpop.eup %587  ;;  %v422_v50 = vadd.f32 1.0, %v586_v48 }
 0x143   : > { %v423_v51 = vadd.f32 1.0, %v588_v49 }
 0x144   : > { %v426_v52 = vmul.f32 0.5, %v422_v50 }
 0x145   : > { %v427_v53 = vmul.f32 0.5, %v423_v51 }
 0x146   : > { %v430_v54 = vmul.f32 %v574_v20, %v426_v52 }
 0x147   : > { %v431_v55 = vmul.f32 %v576_v21, %v427_v53 }
 0x148   : > { %434 = vst [vmem:[%s262_s24 + $0x10] sm:$0xff] %v430_v54 }
 0x149   : > { %435 = vst [vmem:[%s262_s24 + $0x18] sm:$0xff] %v431_v55 }
 0x14a PF: > { %s15_s20 = sadd.s32 1, %s611_s20   ;;  %s711_s18 = smov %s607_s19 }
 0x14b   : > { %p12_p5 = scmp.ge.s32.totalorder %s15_s20, 4   ;;  %s712_s19 = smov %s714_s21 }
 0x14d   :  { %14 = sbr.rel (!%p12_p5) target bundleno = 2 (0x2), region = 70 }

</bundles_post_ra>
